<compile_context>
chip_gen: v6e
topology: v6e:2x2x1
jax: 0.10.0
libtpu: 0.0.40
codegen_flags: <defaults>
</compile_context>

<pallas_src>
import functools

import jax
import jax.numpy as jnp
from jax.experimental import pallas as pl
from jax.experimental.pallas import tpu as pltpu

_LANE = 128   # lane width; feature dims are zero-padded to a multiple of this


def _round_up(n, m):
    return ((n + m - 1) // m) * m


# ---------------------------------------------------------------------------
# Fused MLP kernel: one gridless invocation computes the whole forward pass.
#   x_ref: (B, in_dims)  f32   unpadded activations (full-array block)
#   w_ref: (L+1, P, P)   bf16  all layer weights, zero-padded + stacked
#   b_ref: (L+1, B, P)   f32   all biases, pre-broadcast over batch + stacked
#   o_ref: (B, out_dims) f32   unpadded output (full-array block)
# Weights are stored (in, out), i.e. already transposed vs. torch.nn.Linear,
# so the kernel computes h @ W + b directly.  Zero padding is exact through
# every matmul / bias-add / ReLU, so no masking is needed until the final
# column slice.
# ---------------------------------------------------------------------------
def _fused_mlp_kernel(x_ref, w_ref, b_ref, o_ref, *, num_hidden, in_dims, out_dims):
    # First hidden layer: slice the padded weight down to the true fan-in so
    # the contraction dims agree (rows >= in_dims are zero anyway).
    h = x_ref[...]                                   # (B, in_dims) f32
    w0 = w_ref[0][:in_dims, :]                       # (in_dims, P) bf16
    h = jnp.dot(h.astype(jnp.bfloat16), w0, preferred_element_type=jnp.float32)
    h = jnp.maximum(h + b_ref[0], 0.0)               # bias + ReLU in f32

    # Remaining hidden layers (fully padded; exact because pad rows/cols are 0).
    for l in range(1, num_hidden):
        h = jnp.dot(h.astype(jnp.bfloat16), w_ref[l],
                    preferred_element_type=jnp.float32)
        h = jnp.maximum(h + b_ref[l], 0.0)

    # Output layer: no ReLU; write only the valid columns (cheap masked store).
    h = jnp.dot(h.astype(jnp.bfloat16), w_ref[num_hidden],
                preferred_element_type=jnp.float32)
    h = h + b_ref[num_hidden]
    o_ref[...] = h[:, :out_dims].astype(o_ref.dtype)


@functools.partial(jax.jit, static_argnames=("output_dims",))
def fused_mlp_forward(x, w_stack, b_stack, *, output_dims):
    """x: (B, In) f32; w_stack: (L+1, P, P) bf16; b_stack: (L+1, B, P) f32.

    Returns (B, output_dims) f32 == TestModel.forward(x).
    """
    B, in_dims = x.shape
    num_hidden = w_stack.shape[0] - 1
    kernel = functools.partial(_fused_mlp_kernel, num_hidden=num_hidden,
                               in_dims=in_dims, out_dims=output_dims)
    vmem = pl.BlockSpec(memory_space=pltpu.MemorySpace.VMEM)   # whole array in VMEM
    return pl.pallas_call(
        kernel,
        out_shape=jax.ShapeDtypeStruct((B, output_dims), jnp.float32),
        in_specs=[vmem, vmem, vmem],
        out_specs=vmem,
    )(x, w_stack, b_stack)


# ---------------------------------------------------------------------------
# Parameter construction (mimics nn.Linear default init; weights stored as
# (in, out) == torch weight transposed) and one-time packing:
#   - every weight zero-padded to (P, P), cast to bf16, stacked
#   - every bias zero-padded to P, broadcast to (batch, P), kept f32, stacked
# ---------------------------------------------------------------------------
def init_params(key, input_dims, output_dims, num_layers, num_nodes):
    dims = [input_dims] + [num_nodes] * num_layers + [output_dims]
    params = []
    for i in range(len(dims) - 1):
        fan_in, fan_out = dims[i], dims[i + 1]
        key, kw, kb = jax.random.split(key, 3)
        bound = 1.0 / float(fan_in) ** 0.5
        W = jax.random.uniform(kw, (fan_in, fan_out), jnp.float32, -bound, bound)
        b = jax.random.uniform(kb, (fan_out,), jnp.float32, -bound, bound)
        params.append((W, b))
    return params


def pack_params(params, batch):
    n = len(params)
    P = _round_up(max(max(W.shape) for (W, _) in params), _LANE)
    w_stack = jnp.zeros((n, P, P), jnp.bfloat16)
    b_stack = jnp.zeros((n, batch, P), jnp.float32)
    for l, (W, b) in enumerate(params):
        fi, fo = W.shape
        w_stack = w_stack.at[l, :fi, :fo].set(W.astype(jnp.bfloat16))
        b_stack = b_stack.at[l, :, :fo].set(jnp.broadcast_to(b, (batch, fo)))
    return w_stack, b_stack


if __name__ == "__main__":
    # Small shapes consistent with the module's MLP forward.
    batch = 8
    input_dims = 32
    num_layers = 3       # number of Linear+ReLU layers in self.fcs
    num_nodes = 64
    output_dims = 16

    key = jax.random.PRNGKey(0)
    key, kx = jax.random.split(key)
    x = jax.random.normal(kx, (batch, input_dims), jnp.float32)

    params = init_params(key, input_dims, output_dims, num_layers, num_nodes)
    w_stack, b_stack = pack_params(params, batch)   # packed once, kept resident

    out = fused_mlp_forward(x, w_stack, b_stack, output_dims=output_dims)
    out = jax.block_until_ready(out)

    # Pure-JAX reference using the SAME bf16 dot inputs / f32 accumulation as
    # the kernel, so the comparison stays meaningful and reasonably tight.
    ref = x
    for (W, b) in params[:-1]:
        ref = jnp.dot(ref.astype(jnp.bfloat16), W.astype(jnp.bfloat16),
                      preferred_element_type=jnp.float32) + b
        ref = jnp.maximum(ref, 0.0)
    W, b = params[-1]
    ref = jnp.dot(ref.astype(jnp.bfloat16), W.astype(jnp.bfloat16),
                  preferred_element_type=jnp.float32) + b

    assert out.shape == (batch, output_dims)
    assert jnp.allclose(out, ref, atol=1e-2, rtol=1e-2), (
        "max abs err = %g" % float(jnp.max(jnp.abs(out - ref))))

    print("KERNEL_OK")
</pallas_src>

<mosaic_0001>
module attributes {stable_mosaic.version = 11 : i64} {
  func.func @_fused_mlp_kernel(%arg0: memref<8x32xf32, #tpu.memory_space<vmem>>, %arg1: memref<4x128x128xbf16, #tpu.memory_space<vmem>>, %arg2: memref<4x8x128xf32, #tpu.memory_space<vmem>>, %arg3: memref<8x16xf32, #tpu.memory_space<vmem>>) attributes {dimension_semantics = [], scalar_prefetch = 0 : i64, scratch_operands = 0 : i64, tpu.core_type = #tpu.core_type<tc>} {
    %c0 = arith.constant 0 : index
    %c0_0 = arith.constant 0 : index
    %0 = vector.load %arg0[%c0, %c0_0] : memref<8x32xf32, #tpu.memory_space<vmem>>, vector<8x32xf32>
    %c0_1 = arith.constant 0 : index
    %c0_2 = arith.constant 0 : index
    %c0_3 = arith.constant 0 : index
    %1 = vector.load %arg1[%c0_1, %c0_2, %c0_3] : memref<4x128x128xbf16, #tpu.memory_space<vmem>>, vector<1x128x128xbf16>
    %2 = vector.shape_cast %1 : vector<1x128x128xbf16> to vector<128x128xbf16>
    %3 = vector.extract_strided_slice %2 {offsets = [0, 0], sizes = [32, 128], strides = [1, 1]} : vector<128x128xbf16> to vector<32x128xbf16>
    %4 = arith.truncf %0 : vector<8x32xf32> to vector<8x32xbf16>
    %cst = arith.constant dense<0.000000e+00> : vector<8x128xf32>
    %5 = tpu.matmul %4, %3, %cst {dimension_numbers = #tpu.dot_dimension_numbers<[1], [0], [0], [1], [0, 0, 1, 1], [], []>} : vector<8x32xbf16>, vector<32x128xbf16>, vector<8x128xf32> -> vector<8x128xf32>
    %c0_4 = arith.constant 0 : index
    %c0_5 = arith.constant 0 : index
    %c0_6 = arith.constant 0 : index
    %6 = vector.load %arg2[%c0_4, %c0_5, %c0_6] : memref<4x8x128xf32, #tpu.memory_space<vmem>>, vector<1x8x128xf32>
    %7 = vector.shape_cast %6 : vector<1x8x128xf32> to vector<8x128xf32>
    %8 = arith.addf %5, %7 : vector<8x128xf32>
    %cst_7 = arith.constant 0.000000e+00 : f32
    %9 = vector.broadcast %cst_7 : f32 to vector<8x128xf32>
    %10 = arith.maximumf %8, %9 : vector<8x128xf32>
    %11 = arith.truncf %10 : vector<8x128xf32> to vector<8x128xbf16>
    %c1 = arith.constant 1 : index
    %c0_8 = arith.constant 0 : index
    %c0_9 = arith.constant 0 : index
    %12 = vector.load %arg1[%c1, %c0_8, %c0_9] : memref<4x128x128xbf16, #tpu.memory_space<vmem>>, vector<1x128x128xbf16>
    %13 = vector.shape_cast %12 : vector<1x128x128xbf16> to vector<128x128xbf16>
    %cst_10 = arith.constant dense<0.000000e+00> : vector<8x128xf32>
    %14 = tpu.matmul %11, %13, %cst_10 {dimension_numbers = #tpu.dot_dimension_numbers<[1], [0], [0], [1], [0, 0, 1, 1], [], []>} : vector<8x128xbf16>, vector<128x128xbf16>, vector<8x128xf32> -> vector<8x128xf32>
    %c1_11 = arith.constant 1 : index
    %c0_12 = arith.constant 0 : index
    %c0_13 = arith.constant 0 : index
    %15 = vector.load %arg2[%c1_11, %c0_12, %c0_13] : memref<4x8x128xf32, #tpu.memory_space<vmem>>, vector<1x8x128xf32>
    %16 = vector.shape_cast %15 : vector<1x8x128xf32> to vector<8x128xf32>
    %17 = arith.addf %14, %16 : vector<8x128xf32>
    %cst_14 = arith.constant 0.000000e+00 : f32
    %18 = vector.broadcast %cst_14 : f32 to vector<8x128xf32>
    %19 = arith.maximumf %17, %18 : vector<8x128xf32>
    %20 = arith.truncf %19 : vector<8x128xf32> to vector<8x128xbf16>
    %c2 = arith.constant 2 : index
    %c0_15 = arith.constant 0 : index
    %c0_16 = arith.constant 0 : index
    %21 = vector.load %arg1[%c2, %c0_15, %c0_16] : memref<4x128x128xbf16, #tpu.memory_space<vmem>>, vector<1x128x128xbf16>
    %22 = vector.shape_cast %21 : vector<1x128x128xbf16> to vector<128x128xbf16>
    %cst_17 = arith.constant dense<0.000000e+00> : vector<8x128xf32>
    %23 = tpu.matmul %20, %22, %cst_17 {dimension_numbers = #tpu.dot_dimension_numbers<[1], [0], [0], [1], [0, 0, 1, 1], [], []>} : vector<8x128xbf16>, vector<128x128xbf16>, vector<8x128xf32> -> vector<8x128xf32>
    %c2_18 = arith.constant 2 : index
    %c0_19 = arith.constant 0 : index
    %c0_20 = arith.constant 0 : index
    %24 = vector.load %arg2[%c2_18, %c0_19, %c0_20] : memref<4x8x128xf32, #tpu.memory_space<vmem>>, vector<1x8x128xf32>
    %25 = vector.shape_cast %24 : vector<1x8x128xf32> to vector<8x128xf32>
    %26 = arith.addf %23, %25 : vector<8x128xf32>
    %cst_21 = arith.constant 0.000000e+00 : f32
    %27 = vector.broadcast %cst_21 : f32 to vector<8x128xf32>
    %28 = arith.maximumf %26, %27 : vector<8x128xf32>
    %29 = arith.truncf %28 : vector<8x128xf32> to vector<8x128xbf16>
    %c3 = arith.constant 3 : index
    %c0_22 = arith.constant 0 : index
    %c0_23 = arith.constant 0 : index
    %30 = vector.load %arg1[%c3, %c0_22, %c0_23] : memref<4x128x128xbf16, #tpu.memory_space<vmem>>, vector<1x128x128xbf16>
    %31 = vector.shape_cast %30 : vector<1x128x128xbf16> to vector<128x128xbf16>
    %cst_24 = arith.constant dense<0.000000e+00> : vector<8x128xf32>
    %32 = tpu.matmul %29, %31, %cst_24 {dimension_numbers = #tpu.dot_dimension_numbers<[1], [0], [0], [1], [0, 0, 1, 1], [], []>} : vector<8x128xbf16>, vector<128x128xbf16>, vector<8x128xf32> -> vector<8x128xf32>
    %c3_25 = arith.constant 3 : index
    %c0_26 = arith.constant 0 : index
    %c0_27 = arith.constant 0 : index
    %33 = vector.load %arg2[%c3_25, %c0_26, %c0_27] : memref<4x8x128xf32, #tpu.memory_space<vmem>>, vector<1x8x128xf32>
    %34 = vector.shape_cast %33 : vector<1x8x128xf32> to vector<8x128xf32>
    %35 = arith.addf %32, %34 : vector<8x128xf32>
    %36 = vector.extract_strided_slice %35 {offsets = [0, 0], sizes = [8, 16], strides = [1, 1]} : vector<8x128xf32> to vector<8x16xf32>
    %c0_28 = arith.constant 0 : index
    %c0_29 = arith.constant 0 : index
    %37 = vector.load %arg3[%c0_28, %c0_29] : memref<8x16xf32, #tpu.memory_space<vmem>>, vector<8x16xf32>
    tpu.vector_store %arg3[%c0_28, %c0_29], %36 {strides = array<i32>} : memref<8x16xf32, #tpu.memory_space<vmem>>, vector<8x16xf32>,
    return
  }
}

</mosaic_0001>

<bundles_post_ra>
// kernel: fused_mlp_forward.1
= control target key start
LH: loop header
LB: loop body
LE: loop exit
PB: predicated region body
PF: predicated region fallthrough
CT: control target
= control target key end

     0   :  { %8 = vsyncpa [#allocation3], 0  ;;  %s786_s0 = inlined_call_operand.hbm [shape: f32[8,32], index: 0, kind: input, shape index: {}]   ;;  %s787_s1 = inlined_call_operand.hbm [shape: bf16[4,128,128], index: 1, kind: input, shape index: {}]   ;;  %s788_s2 = inlined_call_operand.hbm [shape: f32[4,8,128], index: 2, kind: input, shape index: {}]   ;;  %s789_s3 = inlined_call_operand.hbm [shape: f32[8,16], index: 3, kind: output, shape index: {}]  }
   0x1   :  { %9 = vsyncpa [#allocation6], 0 }
   0x2   :  { %10 = vsyncpa [#allocation4], 0  ;;  %s710_s12 = smov [#allocation5]  }
   0x3   :  { %s26_s13 = sshll.u32 %s710_s12, 4  ;;  %s27_s13 = int_to_ptr.vmem [resolvable:$true] %s26_s13 }
   0x4   :  { %s632_s14 = scalar_lea.vmem %s27_s13, 4096  ;;  %p637_p1 = scmp.lt.s32.totalorder %s27_s13, %s27_s13 }
   0x5   :  { %p633_p0 = scmp.ne.s32.totalorder %s27_s13, %s632_s14  ;;  %p638_p2 = scmp.lt.s32.totalorder %s632_s14, %s632_s14 }
   0x7   :  { %p639_p3 = por %p638_p2, %p637_p1 }
   0x9   :  { %p640_p4 = pnand %p639_p3, %p633_p0 }
   0xb   :  { %643 = shalt.err (!%p640_p4)
}
   0xc   :  { %s711_s15 = smov 64   ;;  %s712_s16 = smov 4  }
   0xd   :  { %32 = dma.hbm_to_vmem [thread:$0]  %s787_s1, 4096, %s27_s13, [#allocation6], %s711_s15, %s711_s15, %s712_s16  }
   0xe   :  { %s713_s19 = smov [#allocation2]   ;;  %s714_s21 = smov [#allocation7]  }
   0xf   :  { %s17_s20 = sshll.u32 %s713_s19, 4  ;;  %s38_s22 = sshll.u32 %s714_s21, 4  ;;  %s18_s20 = int_to_ptr.vmem [resolvable:$true] %s17_s20  ;;  %s39_s22 = int_to_ptr.vmem [resolvable:$true] %s38_s22 }
  0x10   :  { %s652_s23 = scalar_lea.vmem %s18_s20, 128  ;;  %p657_p6 = scmp.lt.s32.totalorder %s18_s20, %s18_s20 }
  0x11   :  { %p653_p5 = scmp.ne.s32.totalorder %s18_s20, %s652_s23  ;;  %p658_p7 = scmp.lt.s32.totalorder %s652_s23, %s652_s23 }
  0x13   :  { %p659_p8 = por %p658_p7, %p657_p6 }
  0x15   :  { %p660_p9 = pnand %p659_p8, %p653_p5 }
  0x17   :  { %663 = shalt.err (!%p660_p9)
}
  0x18   :  { %20 = dma.hbm_to_vmem [thread:$0]  %s786_s0, 128, %s18_s20, [#allocation3]  }
  0x19   :  { %s672_s26 = scalar_lea.vmem %s39_s22, 512  ;;  %p677_p11 = scmp.lt.s32.totalorder %s39_s22, %s39_s22 }
  0x1a   :  { %p673_p10 = scmp.ne.s32.totalorder %s39_s22, %s672_s26  ;;  %p678_p12 = scmp.lt.s32.totalorder %s672_s26, %s672_s26 }
  0x1c   :  { %p679_p13 = por %p678_p12, %p677_p11 }
  0x1e   :  { %p680_p0 = pnand %p679_p13, %p673_p10 }
  0x20   :  { %683 = shalt.err (!%p680_p0)
}
  0x21   :  { %s715_s1 = smov 128   ;;  %s716_s27 = smov 8  }
  0x22   :  { %44 = dma.hbm_to_vmem [thread:$0]  %s788_s2, 512, %s39_s22, [#allocation6], %s715_s1, %s715_s1, %s716_s27  }
  0x23   :  { %704 = dma.done.wait [#allocation3], 128  }
  0x24   :  { %705 = vsyncadd [#allocation3], 4294967168 }
  0x25   :  { %706 = dma.done.wait [#allocation6], 4608  }
  0x26   :  { %707 = vsyncadd [#allocation6], 4294962688  ;;  %v717_v0 = vmov 0.0   ;;  %vm718_vm0 = vmmov 0   ;;  %v598_v1 = vld [vmem:[#allocation5 + $0x8] sm:$0xff]   ;;  %v599_v2 = vld [vmem:[#allocation5] sm:$0xff]  }
  0x27   :  { %520 = vmatprep.subr.bf16.mxu0 %v717_v0  ;;  %524 = vmatprep.mubr.msk.bf16.mxu0 %vm718_vm0, %v717_v0  ;;  %v55_v3 = vld [vmem:[#allocation2] sm:$0xff]  ;;  %v601_v6 = vld [vmem:[#allocation5 + $0x70] sm:$0xff]   ;;  %vm74_vm1 = vcmask 261120   ;;  %v602_v7 = vld [vmem:[#allocation5 + $0x68] sm:$0xff]   ;;  %s719_s0 = smov [#allocation8]   ;;  %vm445_vm2 = vcmask 130048  }
  0x28   :  { %528 = vmatprep.subr.bf16.mxu1 %v717_v0  ;;  %544 = vmatprep.mubr.msk.bf16.mxu1 %vm718_vm0, %v717_v0  ;;  %v600_v4 = vld [vmem:[#allocation5 + $0x78] sm:$0xff]   ;;  %v60_v5 = vpack.c.bf16 %v55_v3, %v55_v3  ;;  %v603_v8 = vld [vmem:[#allocation5 + $0x60] sm:$0xff]   ;;  %v605_v10 = vld [vmem:[#allocation5 + $0x50] sm:$0xff]   ;;  %s453_s2 = sshll.u32 %s719_s0, 4  ;;  %s454_s2 = int_to_ptr.vmem [resolvable:$true] %s453_s2 }
  0x29   :  { %521 = vmatpush3.bf16.msra.mxu0 %v598_v1  ;;  %529 = vmatpush3.bf16.msra.mxu1 %v600_v4  ;;  %v604_v9 = vld [vmem:[#allocation5 + $0x58] sm:$0xff]   ;;  %v606_v11 = vld [vmem:[#allocation5 + $0x48] sm:$0xff]   ;;  %v607_v12 = vld [vmem:[#allocation5 + $0x40] sm:$0xff]   ;;  %s684_s30 = scalar_lea.vmem %s454_s2, 128  ;;  %p689_p2 = scmp.lt.s32.totalorder %s454_s2, %s454_s2 }
  0x2a   :  { %522 = vmatprep.subr.bf16.mxu0 %v717_v0  ;;  %530 = vmatprep.subr.bf16.mxu1 %v717_v0  ;;  %v608_v13 = vld [vmem:[#allocation5 + $0xb8] sm:$0xff]   ;;  %v609_v14 = vld [vmem:[#allocation5 + $0xb0] sm:$0xff]   ;;  %v610_v15 = vld [vmem:[#allocation5 + $0xa8] sm:$0xff]   ;;  %p685_p1 = scmp.ne.s32.totalorder %s454_s2, %s684_s30  ;;  %p690_p3 = scmp.lt.s32.totalorder %s684_s30, %s684_s30 }
  0x2b   :  { %v611_v16 = vld [vmem:[#allocation5 + $0xa0] sm:$0xff]   ;;  %v612_v17 = vld [vmem:[#allocation5 + $0x98] sm:$0xff]   ;;  %v613_v18 = vld [vmem:[#allocation5 + $0x90] sm:$0xff]  }
  0x2c   :  { %v61_v19 = vld [vmem:[#allocation7] sm:$0xff]  ;;  %v614_v27 = vld [vmem:[#allocation5 + $0x88] sm:$0xff]   ;;  %v616_v29 = vld [vmem:[#allocation5 + $0xf8] sm:$0xff]   ;;  %p691_p4 = por %p690_p3, %p689_p2 }
  0x2d   :  { %523 = vmatpush3.bf16.msra.mxu0 %v599_v2  ;;  %531 = vmatpush3.bf16.msra.mxu1 %v601_v6  ;;  %v615_v28 = vld [vmem:[#allocation5 + $0x80] sm:$0xff]   ;;  %v617_v30 = vld [vmem:[#allocation5 + $0xf0] sm:$0xff]   ;;  %v618_v31 = vld [vmem:[#allocation5 + $0xe8] sm:$0xff]  }
  0x2e   :  { %548 = vmatprep.subr.bf16.mxu0 %v717_v0  ;;  %532 = vmatprep.subr.bf16.mxu1 %v717_v0  ;;  %v619_v32 = vld [vmem:[#allocation5 + $0xe0] sm:$0xff]   ;;  %v620_v33 = vld [vmem:[#allocation5 + $0xd8] sm:$0xff]   ;;  %v621_v34 = vld [vmem:[#allocation5 + $0xd0] sm:$0xff]   ;;  %p692_p5 = pnand %p691_p4, %p685_p1 }
  0x2f   :  { %v138_v35 = vld [vmem:[#allocation7 + $0x8] sm:$0xff]  ;;  %v623_v44 = vld [vmem:[#allocation5 + $0xc0] sm:$0xff]   ;;  %v247_v45 = vld [vmem:[#allocation7 + $0x10] sm:$0xff] }
  0x30   :  { %525 = vmatmul.mubr.msk.bf16.vlgmr.msra.gmra.mxu0 %vm74_vm1, %v60_v5  ;;  %v622_v43 = vld [vmem:[#allocation5 + $0xc8] sm:$0xff]   ;;  %v356_v53 = vld [vmem:[#allocation7 + $0x18] sm:$0xff] }
  0x31   :  { %564 = vmatprep.mubr.msk.bf16.mxu0 %vm718_vm0, %v717_v0  ;;  %533 = vmatpush3.bf16.msra.mxu1 %v602_v7 }
  0x32   :  { %534 = vmatprep.subr.bf16.mxu1 %v717_v0  ;;  %549 = vmatpush3.bf16.msra.mxu0 %v608_v13 }
  0x33   :  { %550 = vmatprep.subr.bf16.mxu0 %v717_v0 }
  0x35   :  { %535 = vmatpush3.bf16.msra.mxu1 %v603_v8 }
  0x36   :  { %536 = vmatprep.subr.bf16.mxu1 %v717_v0  ;;  %551 = vmatpush3.bf16.msra.mxu0 %v609_v14 }
  0x37   :  { %552 = vmatprep.subr.bf16.mxu0 %v717_v0 }
  0x39   :  { %537 = vmatpush3.bf16.msra.mxu1 %v604_v9 }
  0x3a   :  { %538 = vmatprep.subr.bf16.mxu1 %v717_v0  ;;  %553 = vmatpush3.bf16.msra.mxu0 %v610_v15 }
  0x3b   :  { %554 = vmatprep.subr.bf16.mxu0 %v717_v0 }
  0x3d   :  { %539 = vmatpush3.bf16.msra.mxu1 %v605_v10 }
  0x3e   :  { %540 = vmatprep.subr.bf16.mxu1 %v717_v0  ;;  %555 = vmatpush3.bf16.msra.mxu0 %v611_v16 }
  0x3f   :  { %556 = vmatprep.subr.bf16.mxu0 %v717_v0 }
  0x41   :  { %541 = vmatpush3.bf16.msra.mxu1 %v606_v11 }
  0x42   :  { %542 = vmatprep.subr.bf16.mxu1 %v717_v0  ;;  %557 = vmatpush3.bf16.msra.mxu0 %v612_v17 }
  0x43   :  { %558 = vmatprep.subr.bf16.mxu0 %v717_v0 }
  0x45   :  { %543 = vmatpush3.bf16.msra.mxu1 %v607_v12 }
  0x46   :  { %568 = vmatprep.subr.bf16.mxu1 %v717_v0  ;;  %559 = vmatpush3.bf16.msra.mxu0 %v613_v18 }
  0x47   :  { %560 = vmatprep.subr.bf16.mxu0 %v717_v0 }
  0x4a   :  { %561 = vmatpush3.bf16.msra.mxu0 %v614_v27 }
  0x4b   :  { %562 = vmatprep.subr.bf16.mxu0 %v717_v0 }
  0x4e   :  { %563 = vmatpush3.bf16.msra.mxu0 %v615_v28 }
  0xf0   :  { %v112_v20 = vpop.f32.mrf.mxu0 }
  0xf1   :  { %v113_v21 = vadd.f32 %v112_v20, %v61_v19 }
  0xf2   :  { %v526_v22 = vpop.f32.mrf.mxu0 }
  0xf3   :  { %v118_v23 = vmax.f32 %v113_v21, 0.0 }
  0xf4   :  { %v115_v24 = vpop.f32.mrf.mxu0 }
  0xf5   :  { %v119_v25 = vpack.c.bf16 %v118_v23, %v118_v23 }
  0xf6   :  { %v527_v26 = vpop.f32.mrf.mxu0 }
  0xf7   :  { %545 = vmatmul.mubr.bf16.vlgmr.msra.gmra.mxu1 %v119_v25 }
  0xf8   :  { %584 = vmatprep.mubr.msk.bf16.mxu1 %vm718_vm0, %v717_v0  ;;  %569 = vmatpush3.bf16.msra.mxu1 %v616_v29 }
  0xf9   :  { %570 = vmatprep.subr.bf16.mxu1 %v717_v0 }
  0xfc   :  { %571 = vmatpush3.bf16.msra.mxu1 %v617_v30 }
  0xfd   :  { %572 = vmatprep.subr.bf16.mxu1 %v717_v0 }
 0x100   :  { %573 = vmatpush3.bf16.msra.mxu1 %v618_v31 }
 0x101   :  { %574 = vmatprep.subr.bf16.mxu1 %v717_v0 }
 0x104   :  { %575 = vmatpush3.bf16.msra.mxu1 %v619_v32 }
 0x105   :  { %576 = vmatprep.subr.bf16.mxu1 %v717_v0 }
 0x108   :  { %577 = vmatpush3.bf16.msra.mxu1 %v620_v33 }
 0x109   :  { %578 = vmatprep.subr.bf16.mxu1 %v717_v0 }
 0x10c   :  { %579 = vmatpush3.bf16.msra.mxu1 %v621_v34 }
 0x10d   :  { %580 = vmatprep.subr.bf16.mxu1 %v717_v0 }
 0x110   :  { %581 = vmatpush3.bf16.msra.mxu1 %v622_v43 }
 0x111   :  { %582 = vmatprep.subr.bf16.mxu1 %v717_v0 }
 0x114   :  { %583 = vmatpush3.bf16.msra.mxu1 %v623_v44 }
 0x1b7   :  { %v221_v36 = vpop.f32.mrf.mxu1 }
 0x1b8   :  { %v222_v37 = vadd.f32 %v221_v36, %v138_v35 }
 0x1b9   :  { %v546_v38 = vpop.f32.mrf.mxu1 }
 0x1ba   :  { %v227_v39 = vmax.f32 %v222_v37, 0.0 }
 0x1bb   :  { %v224_v40 = vpop.f32.mrf.mxu1 }
 0x1bc   :  { %v228_v41 = vpack.c.bf16 %v227_v39, %v227_v39 }
 0x1bd   :  { %v547_v42 = vpop.f32.mrf.mxu1 }
 0x1be   :  { %565 = vmatmul.mubr.bf16.vlgmr.msra.gmra.mxu0 %v228_v41 }
 0x27e   :  { %v330_v46 = vpop.f32.mrf.mxu0 }
 0x27f   :  { %v331_v47 = vadd.f32 %v330_v46, %v247_v45 }
 0x280   :  { %v566_v48 = vpop.f32.mrf.mxu0 }
 0x281   :  { %v336_v49 = vmax.f32 %v331_v47, 0.0 }
 0x282   :  { %v333_v50 = vpop.f32.mrf.mxu0 }
 0x283   :  { %v337_v51 = vpack.c.bf16 %v336_v49, %v336_v49 }
 0x284   :  { %v567_v52 = vpop.f32.mrf.mxu0 }
 0x285   :  { %585 = vmatmul.mubr.bf16.vlgmr.msra.gmra.mxu1 %v337_v51 }
 0x345   :  { %v439_v54 = vpop.f32.mrf.mxu1 }
 0x346   :  { %v440_v55 = vadd.f32 %v439_v54, %v356_v53 }
 0x347   :  { %v586_v56 = vpop.f32.mrf.mxu1 }
 0x348   :  { %446 = vst.msk [vmem:[#allocation8] sm:$0xff] %vm445_vm2, %v440_v55 }
 0x349   :  { %v442_v57 = vpop.f32.mrf.mxu1 }
 0x34a   :  { %695 = shalt.err (!%p692_p5)
}
 0x34b   :  { %456 = dma.vmem_to_hbm [thread:$0]  %s454_s2, 128, %s789_s3, [#allocation4]   ;;  %v587_v58 = vpop.f32.mrf.mxu1 }
 0x34c   :  { %708 = dma.done.wait [#allocation4], 128  }
 0x34d   :  { %709 = vsyncadd [#allocation4], 4294967168 }
 0x34e   :  { %460 = vsyncpa [#allocation3], 1 }
 0x34f   :  { %461 = vsyncpa [#allocation6], 1 }
 0x350   :  { %462 = vsyncpa [#allocation4], 1 }

</bundles_post_ra>
